<compile_context>
chip_gen: v7x
topology: tpu7x:2x2x1
jax: 0.10.0
libtpu: 0.0.40
codegen_flags: <defaults>
</compile_context>

<pallas_src>
import jax
import jax.numpy as jnp
from jax.experimental import pallas as pl
from jax.experimental.pallas import tpu as pltpu

_HIDDEN = (16, 32, 64)  # fixed hidden widths of the node MLP


def node_mlp_kernel(xt_ref,
                    w1_ref, b1_ref,
                    w2_ref, b2_ref,
                    w3_ref, b3_ref,
                    w4_ref, b4_ref,
                    ot_ref):
    # Nodes on the lane axis; every matmul accumulates in f32 on the MXU,
    # bias adds and ReLU stay f32 (v5e-safe), final cast only at the store.
    h = jnp.dot(w1_ref[...], xt_ref[...], preferred_element_type=jnp.float32)
    h = jnp.maximum(h + b1_ref[...], 0.0)                       # [16,  tile_n]
    h = jnp.dot(w2_ref[...], h, preferred_element_type=jnp.float32)
    h = jnp.maximum(h + b2_ref[...], 0.0)                       # [32,  tile_n]
    h = jnp.dot(w3_ref[...], h, preferred_element_type=jnp.float32)
    h = jnp.maximum(h + b3_ref[...], 0.0)                       # [64,  tile_n]
    h = jnp.dot(w4_ref[...], h, preferred_element_type=jnp.float32)
    ot_ref[...] = (h + b4_ref[...]).astype(ot_ref.dtype)        # [feat, tile_n]


def _round_up(a, b):
    return (a + b - 1) // b * b


def _num_tensorcores():
    """Best-effort TensorCore count (v7x: 2/chip, v5e/v6e: 1). Never raises."""
    try:
        info = pltpu.get_tpu_info()
        for attr in ("num_tensorcores", "tensorcores_per_chip",
                     "num_cores", "cores_per_chip"):
            v = getattr(info, attr, None)
            if isinstance(v, int) and v > 0:
                return v
    except Exception:
        pass
    try:
        v = getattr(jax.devices()[0], "num_cores", None)
        if isinstance(v, int) and v > 0:
            return v
    except Exception:
        pass
    return 1


def _pick_tiling(n, tile_n_max, bytes_per_node, vmem_budget, num_tc):
    """Largest lane-multiple (128) node tile fitting the VMEM budget.

    Single-TC parts get the minimum number of grid steps (no forced split);
    multi-TC parts get a grid length rounded up to a multiple of the core
    count so the cores stay balanced under dimension_semantics=("parallel",).
    Returns (tile_n, padded_node_count, num_tiles).
    """
    padded_n = _round_up(n, 128)
    budget_tile = max(128, (vmem_budget // max(bytes_per_node, 1)) // 128 * 128)
    tile_n = min(max(128, tile_n_max // 128 * 128), budget_tile)

    if padded_n <= tile_n:
        # Whole problem fits one tile; only split if there are >=2 cores AND
        # enough rows to give each core a full 128-lane tile.
        num_tiles = num_tc if (num_tc > 1 and padded_n >= num_tc * 128) else 1
    else:
        num_tiles = pl.cdiv(padded_n, tile_n)
        if num_tc > 1:
            num_tiles = _round_up(num_tiles, num_tc)   # avoid straggler core

    tile_n = _round_up(pl.cdiv(padded_n, num_tiles), 128)
    padded = num_tiles * tile_n
    return tile_n, padded, num_tiles


def node_encoder_forward(x, params, *,
                         tile_n=16384,
                         compute_dtype=jnp.bfloat16,
                         out_dtype=jnp.float32,
                         x_transposed=False,
                         out_transposed=False,
                         io_buffers=2,
                         vmem_budget_bytes=12 * 1024 * 1024,
                         num_tensorcores=None):
    """Node-MLP forward.

    x: [N, input_dim] (or [input_dim, N] when x_transposed=True).
    params: w{1..4} in PyTorch [out, in] layout, b{1..4} as [out, 1].
    compute_dtype: dtype fed to the MXU for x / weights (None = keep f32);
        accumulation, bias adds and ReLU always stay f32.
    out_dtype: output dtype (bf16 halves writeback traffic if acceptable).
    x_transposed / out_transposed: accept / return the lane-dense [C, N]
        layout directly, skipping the wrapper-side HBM transpose round trips.
    vmem_budget_bytes: per-step VMEM budget used to cap the node tile
        (12 MiB default stays under v5e's 16 MiB default scoped VMEM).
    """
    if x_transposed:
        input_dim, N = x.shape
        xt = x
    else:
        N, input_dim = x.shape
        # TODO(synk): negotiate an [input_dim, N] producer layout so this
        # transpose (an extra HBM round trip on a memory-bound op) disappears.
        xt = jnp.transpose(x)

    feature_dim = params["w4"].shape[0]          # weights in PyTorch [out, in]

    ws = [params[f"w{i}"] for i in range(1, 5)]
    bs = [params[f"b{i}"] for i in range(1, 5)]

    cdt = compute_dtype if compute_dtype is not None else xt.dtype
    x_bytes = jnp.dtype(cdt).itemsize
    out_bytes = jnp.dtype(out_dtype).itemsize
    # Conservative per-node VMEM cost: pipelined x/out blocks + f32 temporaries.
    bufs = max(2, io_buffers)
    bytes_per_node = (input_dim * x_bytes + feature_dim * out_bytes) * bufs \
        + 4 * (sum(_HIDDEN) + feature_dim)
    const_bytes = sum(int(w.size) * x_bytes for w in ws) \
        + sum(int(b.size) * 4 for b in bs)
    budget = max(vmem_budget_bytes - const_bytes, 128 * bytes_per_node)

    if num_tensorcores is None:
        num_tensorcores = _num_tensorcores()

    tile_n, padded, num_tiles = _pick_tiling(
        N, tile_n, bytes_per_node, budget, num_tensorcores)

    if compute_dtype is not None:
        xt = xt.astype(compute_dtype)
        ws = [w.astype(compute_dtype) for w in ws]
    if padded != N:
        xt = jnp.pad(xt, ((0, 0), (0, padded - N)))

    def const_spec(a):
        # Whole-array operand, index_map never changes: copy once, single-buffer.
        return pl.BlockSpec(a.shape, lambda i: (0, 0),
                            pipeline_mode=pl.Buffered(1))

    # Default Buffered(2); io_buffers=3 sweeps one extra buffer on x / out.
    io_mode = {} if io_buffers == 2 else {"pipeline_mode": pl.Buffered(io_buffers)}
    in_specs = [pl.BlockSpec((input_dim, tile_n), lambda i: (0, i), **io_mode)]
    for w, b in zip(ws, bs):
        in_specs += [const_spec(w), const_spec(b)]
    out_spec = pl.BlockSpec((feature_dim, tile_n), lambda i: (0, i), **io_mode)

    flops = 2 * N * (input_dim * 16 + 16 * 32 + 32 * 64 + 64 * feature_dim)
    bytes_accessed = N * (input_dim * x_bytes + feature_dim * out_bytes) + const_bytes
    cost = pl.CostEstimate(flops=int(flops), transcendentals=0,
                           bytes_accessed=int(bytes_accessed))

    yt = pl.pallas_call(
        node_mlp_kernel,
        out_shape=jax.ShapeDtypeStruct((feature_dim, padded), out_dtype),
        grid_spec=pl.GridSpec(
            grid=(num_tiles,),
            in_specs=in_specs,
            out_specs=out_spec,
        ),
        compiler_params=pltpu.CompilerParams(
            dimension_semantics=("parallel",)),
        cost_estimate=cost,
    )(xt, ws[0], bs[0], ws[1], bs[1], ws[2], bs[2], ws[3], bs[3])

    if out_transposed:
        return yt[:, :N]                          # [feature_dim, N], lane-dense
    # TODO(synk): when feature_dim >= 128, emit natural [N, feature_dim] stores
    # directly from the kernel (still lane-dense) so this boundary transpose
    # also disappears; for feature_dim < 128 the transposed store is cheaper.
    return jnp.transpose(yt)[:N]                  # [N, feature_dim]


def node_encoder_model(x, edge_index, edge_attr, u, batch, params, **kwargs):
    """Matches NodeEncoderModel.forward(x, edge_index, edge_attr, u, batch)."""
    del edge_index, edge_attr, u, batch          # ignored by the PyTorch module
    return node_encoder_forward(x, params, **kwargs)


def init_params(key, input_dim, feature_dim):
    """Synthetic weights matching torch.nn.Linear's default init and layout."""
    dims = [input_dim, 16, 32, 64, feature_dim]
    params = {}
    for li in range(4):
        key, kw, kb = jax.random.split(key, 3)
        fan_in, fan_out = dims[li], dims[li + 1]
        bound = 1.0 / jnp.sqrt(fan_in)
        # PyTorch layout: weight [out, in]; bias kept 2D [out, 1] (lane-friendly).
        params[f"w{li+1}"] = jax.random.uniform(
            kw, (fan_out, fan_in), jnp.float32, -bound, bound)
        params[f"b{li+1}"] = jax.random.uniform(
            kb, (fan_out, 1), jnp.float32, -bound, bound)
    return params


def reference_forward(x, params):
    h = x
    for li in range(1, 5):
        w = params[f"w{li}"]          # [out, in]
        b = params[f"b{li}"]          # [out, 1]
        h = h @ w.T + b[:, 0]
        if li < 4:
            h = jnp.maximum(h, 0.0)
    return h


if __name__ == "__main__":
    input_dim = 8
    feature_dim = 32
    N = 64  # number of nodes

    key = jax.random.PRNGKey(0)
    key, kx = jax.random.split(key)
    x = jax.random.normal(kx, (N, input_dim), jnp.float32)

    # Unused graph-structure inputs (the forward pass ignores them).
    edge_index = jnp.zeros((2, 16), jnp.int32)
    edge_attr = jnp.zeros((16, 4), jnp.float32)
    u = jnp.zeros((1, 4), jnp.float32)
    batch = jnp.zeros((N,), jnp.int32)

    params = init_params(key, input_dim, feature_dim)
    ref = reference_forward(x, params)

    # 1) Full-precision path (tolerance loosened vs the old 1e-4: on v5e the
    #    f32 matmul is emulated on the bf16 MXU).
    out_f32 = jax.block_until_ready(
        node_encoder_model(x, edge_index, edge_attr, u, batch, params,
                           compute_dtype=None))
    assert out_f32.shape == (N, feature_dim)
    assert jnp.allclose(out_f32, ref, atol=2e-3, rtol=2e-3), "f32 path mismatch"

    # 2) Default path: bf16 MXU inputs, f32 accumulation / bias / ReLU, f32 out.
    out_def = jax.block_until_ready(
        node_encoder_model(x, edge_index, edge_attr, u, batch, params))
    assert out_def.shape == (N, feature_dim)
    assert jnp.allclose(out_def, ref, atol=5e-2, rtol=5e-2), "bf16 path drifted"

    # 3) Zero-transpose path: caller supplies [in, N], receives lane-dense
    #    [feat, N] bf16 output (no wrapper HBM transposes, halved writeback).
    yt = jax.block_until_ready(
        node_encoder_forward(jnp.transpose(x), params,
                             x_transposed=True, out_transposed=True,
                             out_dtype=jnp.bfloat16))
    assert yt.shape == (feature_dim, N)
    assert jnp.allclose(jnp.transpose(yt.astype(jnp.float32)), ref,
                        atol=7e-2, rtol=7e-2), "transposed-I/O bf16-out drifted"

    print("KERNEL_OK")
</pallas_src>

<mosaic_0001>
module attributes {stable_mosaic.version = 11 : i64} {
  func.func @node_mlp_kernel(%arg0: i32, %arg1: memref<8x128xf32, #tpu.memory_space<vmem>>, %arg2: memref<16x8xf32, #tpu.memory_space<vmem>>, %arg3: memref<16x1xf32, #tpu.memory_space<vmem>>, %arg4: memref<32x16xf32, #tpu.memory_space<vmem>>, %arg5: memref<32x1xf32, #tpu.memory_space<vmem>>, %arg6: memref<64x32xf32, #tpu.memory_space<vmem>>, %arg7: memref<64x1xf32, #tpu.memory_space<vmem>>, %arg8: memref<32x64xf32, #tpu.memory_space<vmem>>, %arg9: memref<32x1xf32, #tpu.memory_space<vmem>>, %arg10: memref<32x128xf32, #tpu.memory_space<vmem>>) attributes {dimension_semantics = [#tpu.dimension_semantics<parallel>], iteration_bounds = array<i64: 1>, scalar_prefetch = 0 : i64, scratch_operands = 0 : i64, tpu.core_type = #tpu.core_type<tc>, window_params = [{transform_indices = @transform_0, window_bounds = array<i64: 8, 128>}, {pipeline_mode = #tpu.pipeline_mode<synchronous>, transform_indices = @transform_1, window_bounds = array<i64: 16, 8>}, {pipeline_mode = #tpu.pipeline_mode<synchronous>, transform_indices = @transform_2, window_bounds = array<i64: 16, 1>}, {pipeline_mode = #tpu.pipeline_mode<synchronous>, transform_indices = @transform_3, window_bounds = array<i64: 32, 16>}, {pipeline_mode = #tpu.pipeline_mode<synchronous>, transform_indices = @transform_4, window_bounds = array<i64: 32, 1>}, {pipeline_mode = #tpu.pipeline_mode<synchronous>, transform_indices = @transform_5, window_bounds = array<i64: 64, 32>}, {pipeline_mode = #tpu.pipeline_mode<synchronous>, transform_indices = @transform_6, window_bounds = array<i64: 64, 1>}, {pipeline_mode = #tpu.pipeline_mode<synchronous>, transform_indices = @transform_7, window_bounds = array<i64: 32, 64>}, {pipeline_mode = #tpu.pipeline_mode<synchronous>, transform_indices = @transform_8, window_bounds = array<i64: 32, 1>}, {transform_indices = @transform_9, window_bounds = array<i64: 32, 128>}]} {
    %c0 = arith.constant 0 : index
    %c0_0 = arith.constant 0 : index
    %0 = vector.load %arg2[%c0, %c0_0] : memref<16x8xf32, #tpu.memory_space<vmem>>, vector<16x8xf32>
    %c0_1 = arith.constant 0 : index
    %c0_2 = arith.constant 0 : index
    %1 = vector.load %arg1[%c0_1, %c0_2] : memref<8x128xf32, #tpu.memory_space<vmem>>, vector<8x128xf32>
    %cst = arith.constant dense<0.000000e+00> : vector<16x128xf32>
    %2 = tpu.matmul %0, %1, %cst {dimension_numbers = #tpu.dot_dimension_numbers<[1], [0], [0], [1], [0, 0, 1, 1], [], []>} : vector<16x8xf32>, vector<8x128xf32>, vector<16x128xf32> -> vector<16x128xf32>
    %c0_3 = arith.constant 0 : index
    %c0_4 = arith.constant 0 : index
    %3 = vector.load %arg3[%c0_3, %c0_4] : memref<16x1xf32, #tpu.memory_space<vmem>>, vector<16x1xf32>
    %4 = vector.broadcast %3 : vector<16x1xf32> to vector<16x128xf32>
    %5 = arith.addf %2, %4 : vector<16x128xf32>
    %cst_5 = arith.constant 0.000000e+00 : f32
    %6 = vector.broadcast %cst_5 : f32 to vector<16x128xf32>
    %7 = arith.maximumf %5, %6 : vector<16x128xf32>
    %c0_6 = arith.constant 0 : index
    %c0_7 = arith.constant 0 : index
    %8 = vector.load %arg4[%c0_6, %c0_7] : memref<32x16xf32, #tpu.memory_space<vmem>>, vector<32x16xf32>
    %cst_8 = arith.constant dense<0.000000e+00> : vector<32x128xf32>
    %9 = tpu.matmul %8, %7, %cst_8 {dimension_numbers = #tpu.dot_dimension_numbers<[1], [0], [0], [1], [0, 0, 1, 1], [], []>} : vector<32x16xf32>, vector<16x128xf32>, vector<32x128xf32> -> vector<32x128xf32>
    %c0_9 = arith.constant 0 : index
    %c0_10 = arith.constant 0 : index
    %10 = vector.load %arg5[%c0_9, %c0_10] : memref<32x1xf32, #tpu.memory_space<vmem>>, vector<32x1xf32>
    %11 = vector.broadcast %10 : vector<32x1xf32> to vector<32x128xf32>
    %12 = arith.addf %9, %11 : vector<32x128xf32>
    %cst_11 = arith.constant 0.000000e+00 : f32
    %13 = vector.broadcast %cst_11 : f32 to vector<32x128xf32>
    %14 = arith.maximumf %12, %13 : vector<32x128xf32>
    %c0_12 = arith.constant 0 : index
    %c0_13 = arith.constant 0 : index
    %15 = vector.load %arg6[%c0_12, %c0_13] : memref<64x32xf32, #tpu.memory_space<vmem>>, vector<64x32xf32>
    %cst_14 = arith.constant dense<0.000000e+00> : vector<64x128xf32>
    %16 = tpu.matmul %15, %14, %cst_14 {dimension_numbers = #tpu.dot_dimension_numbers<[1], [0], [0], [1], [0, 0, 1, 1], [], []>} : vector<64x32xf32>, vector<32x128xf32>, vector<64x128xf32> -> vector<64x128xf32>
    %c0_15 = arith.constant 0 : index
    %c0_16 = arith.constant 0 : index
    %17 = vector.load %arg7[%c0_15, %c0_16] : memref<64x1xf32, #tpu.memory_space<vmem>>, vector<64x1xf32>
    %18 = vector.broadcast %17 : vector<64x1xf32> to vector<64x128xf32>
    %19 = arith.addf %16, %18 : vector<64x128xf32>
    %cst_17 = arith.constant 0.000000e+00 : f32
    %20 = vector.broadcast %cst_17 : f32 to vector<64x128xf32>
    %21 = arith.maximumf %19, %20 : vector<64x128xf32>
    %c0_18 = arith.constant 0 : index
    %c0_19 = arith.constant 0 : index
    %22 = vector.load %arg8[%c0_18, %c0_19] : memref<32x64xf32, #tpu.memory_space<vmem>>, vector<32x64xf32>
    %cst_20 = arith.constant dense<0.000000e+00> : vector<32x128xf32>
    %23 = tpu.matmul %22, %21, %cst_20 {dimension_numbers = #tpu.dot_dimension_numbers<[1], [0], [0], [1], [0, 0, 1, 1], [], []>} : vector<32x64xf32>, vector<64x128xf32>, vector<32x128xf32> -> vector<32x128xf32>
    %c0_21 = arith.constant 0 : index
    %c0_22 = arith.constant 0 : index
    %24 = vector.load %arg9[%c0_21, %c0_22] : memref<32x1xf32, #tpu.memory_space<vmem>>, vector<32x1xf32>
    %25 = vector.broadcast %24 : vector<32x1xf32> to vector<32x128xf32>
    %26 = arith.addf %23, %25 : vector<32x128xf32>
    %c0_23 = arith.constant 0 : index
    %c0_24 = arith.constant 0 : index
    %27 = vector.load %arg10[%c0_23, %c0_24] : memref<32x128xf32, #tpu.memory_space<vmem>>, vector<32x128xf32>
    tpu.vector_store %arg10[%c0_23, %c0_24], %26 {strides = array<i32>} : memref<32x128xf32, #tpu.memory_space<vmem>>, vector<32x128xf32>,
    return
  }
  func.func @transform_0(%arg0: i32) -> (i32, i32) {
    %c0_i32 = arith.constant 0 : i32
    %c0_i32_0 = arith.constant 0 : i32
    return %c0_i32, %arg0 : i32, i32
  }
  func.func @transform_1(%arg0: i32) -> (i32, i32) {
    %c0_i32 = arith.constant 0 : i32
    %c0_i32_0 = arith.constant 0 : i32
    %c0_i32_1 = arith.constant 0 : i32
    return %c0_i32, %c0_i32_0 : i32, i32
  }
  func.func @transform_2(%arg0: i32) -> (i32, i32) {
    %c0_i32 = arith.constant 0 : i32
    %c0_i32_0 = arith.constant 0 : i32
    %c0_i32_1 = arith.constant 0 : i32
    return %c0_i32, %c0_i32_0 : i32, i32
  }
  func.func @transform_3(%arg0: i32) -> (i32, i32) {
    %c0_i32 = arith.constant 0 : i32
    %c0_i32_0 = arith.constant 0 : i32
    %c0_i32_1 = arith.constant 0 : i32
    return %c0_i32, %c0_i32_0 : i32, i32
  }
  func.func @transform_4(%arg0: i32) -> (i32, i32) {
    %c0_i32 = arith.constant 0 : i32
    %c0_i32_0 = arith.constant 0 : i32
    %c0_i32_1 = arith.constant 0 : i32
    return %c0_i32, %c0_i32_0 : i32, i32
  }
  func.func @transform_5(%arg0: i32) -> (i32, i32) {
    %c0_i32 = arith.constant 0 : i32
    %c0_i32_0 = arith.constant 0 : i32
    %c0_i32_1 = arith.constant 0 : i32
    return %c0_i32, %c0_i32_0 : i32, i32
  }
  func.func @transform_6(%arg0: i32) -> (i32, i32) {
    %c0_i32 = arith.constant 0 : i32
    %c0_i32_0 = arith.constant 0 : i32
    %c0_i32_1 = arith.constant 0 : i32
    return %c0_i32, %c0_i32_0 : i32, i32
  }
  func.func @transform_7(%arg0: i32) -> (i32, i32) {
    %c0_i32 = arith.constant 0 : i32
    %c0_i32_0 = arith.constant 0 : i32
    %c0_i32_1 = arith.constant 0 : i32
    return %c0_i32, %c0_i32_0 : i32, i32
  }
  func.func @transform_8(%arg0: i32) -> (i32, i32) {
    %c0_i32 = arith.constant 0 : i32
    %c0_i32_0 = arith.constant 0 : i32
    %c0_i32_1 = arith.constant 0 : i32
    return %c0_i32, %c0_i32_0 : i32, i32
  }
  func.func @transform_9(%arg0: i32) -> (i32, i32) {
    %c0_i32 = arith.constant 0 : i32
    %c0_i32_0 = arith.constant 0 : i32
    return %c0_i32, %arg0 : i32, i32
  }
}

</mosaic_0001>

<bundles_post_ra>
// kernel: tpu_custom_call.1
= control target key start
LH: loop header
LB: loop body
LE: loop exit
PB: predicated region body
PF: predicated region fallthrough
CT: control target
= control target key end

     0   :  { %vm48_vm0 = vcmask 64512   ;;  %v768_v4 = vmov 0   ;;  %s961_s0 = inlined_call_operand.vmem [shape: f32[8,128], index: 0, kind: input, shape index: {}]   ;;  %s962_s1 = inlined_call_operand.vmem [shape: f32[16,8], index: 1, kind: input, shape index: {}]   ;;  %s963_s2 = inlined_call_operand.vmem [shape: f32[16,1], index: 2, kind: input, shape index: {}]   ;;  %s964_s3 = inlined_call_operand.vmem [shape: f32[32,16], index: 3, kind: input, shape index: {}]   ;;  %s965_s4 = inlined_call_operand.vmem [shape: f32[32,1], index: 4, kind: input, shape index: {}]   ;;  %s966_s5 = inlined_call_operand.vmem [shape: f32[64,32], index: 5, kind: input, shape index: {}]   ;;  %s967_s6 = inlined_call_operand.vmem [shape: f32[64,1], index: 6, kind: input, shape index: {}]   ;;  %s968_s7 = inlined_call_operand.vmem [shape: f32[32,64], index: 7, kind: input, shape index: {}]   ;;  %s969_s8 = inlined_call_operand.vmem [shape: f32[32,1], index: 8, kind: input, shape index: {}]   ;;  %s970_s9 = inlined_call_operand.hbm [shape: f32[32,128], index: 9, kind: output, shape index: {}]  }
   0x1   :  { %v35_v0 = vld [vmem:[%s961_s0] sm:$0xff]  ;;  %v34_v2 = vld [vmem:[%s962_s1 + $0x8] sm:$0xff]  ;;  %742 = vset.pattern.permute.xlu0 %v768_v4  ;;  %743 = vset.pattern.permute.xlu1 %v768_v4 }
   0x2   :  { %v33_v1 = vld [vmem:[%s962_s1] sm:$0xff]  ;;  %653 = vmatprep.subr.mxu0 %v35_v0  ;;  %v37_v5 = vld [vmem:[%s963_s2 + $0x8] sm:$0xff] }
   0x3   :  { %655 = vmatprep.mubr.msk.f32.mxu0 %vm48_vm0, %v33_v1  ;;  %v36_v3 = vld [vmem:[%s963_s2] sm:$0xff]  ;;  %654 = vmatpush3.msra.mxu0 %v35_v0 }
   0x4   :  { %656 = vmatmul.mubr.msk.f32.vlgmr.msra.gmra.mrb[0].mxu0 %vm48_vm0, %v34_v2  ;;  %40 = vperm.xlu0 %742, %v36_v3  }
   0x5   :  { %14 = vsyncpa [#allocation3], 0  ;;  %v138_v6 = vld [vmem:[%s965_s4 + $0x10] sm:$0xff]  ;;  %v270_v7 = vld [vmem:[%s967_s6] sm:$0xff]  ;;  %vm160_vm1 = vcmask 130048   ;;  %vm318_vm2 = vcmask 261120  }
   0x6   :  { %v272_v8 = vld [vmem:[%s967_s6 + $0x10] sm:$0xff]  ;;  %v274_v9 = vld [vmem:[%s967_s6 + $0x20] sm:$0xff]  ;;  %v137_v15 = vld [vmem:[%s965_s4 + $0x8] sm:$0xff]  ;;  %vm484_vm3 = vcmask 523264   ;;  %s769_s25 = smov [#allocation2]  }
   0x7   :  { %v276_v10 = vld [vmem:[%s967_s6 + $0x30] sm:$0xff]  ;;  %v460_v11 = vld [vmem:[%s969_s8] sm:$0xff]  ;;  %v139_v16 = vld [vmem:[%s965_s4 + $0x18] sm:$0xff]  ;;  %s591_s26 = sshll.u32 %s769_s25, 4  ;;  %s592_s26 = int_to_ptr.vmem [resolvable:$true] %s591_s26 }
   0x8   :  { %45 = vperm.xlu0 %742, %v37_v5   ;;  %v462_v12 = vld [vmem:[%s969_s8 + $0x10] sm:$0xff]  ;;  %v132_v13 = vld [vmem:[%s964_s3] sm:$0xff]  ;;  %v271_v17 = vld [vmem:[%s967_s6 + $0x8] sm:$0xff]  ;;  %p749_p1 = scmp.lt.s32.totalorder %s592_s26, %s592_s26 }
   0x9   :  { %662 = vmatprep.mubr.msk.f32.mxu1 %vm160_vm1, %v132_v13  ;;  %v136_v14 = vld [vmem:[%s965_s4] sm:$0xff]  ;;  %v273_v18 = vld [vmem:[%s967_s6 + $0x18] sm:$0xff]  ;;  %v275_v19 = vld [vmem:[%s967_s6 + $0x28] sm:$0xff] }
   0xa   :  { %142 = vperm.xlu1 %743, %v136_v14   ;;  %v277_v20 = vld [vmem:[%s967_s6 + $0x38] sm:$0xff]  ;;  %v461_v21 = vld [vmem:[%s969_s8 + $0x8] sm:$0xff]  ;;  %v134_v33 = vld [vmem:[%s964_s3 + $0x10] sm:$0xff] }
   0xb   :  { %v463_v22 = vld [vmem:[%s969_s8 + $0x18] sm:$0xff]  ;;  %v133_v32 = vld [vmem:[%s964_s3 + $0x8] sm:$0xff]  ;;  %v262_v35 = vld [vmem:[%s966_s5] sm:$0xff] }
   0xc   :  { %152 = vperm.xlu0 %742, %v138_v6   ;;  %v135_v34 = vld [vmem:[%s964_s3 + $0x18] sm:$0xff]  ;;  %676 = vmatprep.mubr.msk.f32.mxu0 %vm318_vm2, %v262_v35  ;;  %v263_v54 = vld [vmem:[%s966_s5 + $0x8] sm:$0xff]  ;;  %v264_v55 = vld [vmem:[%s966_s5 + $0x10] sm:$0xff] }
   0xd   :  { %v265_v56 = vld [vmem:[%s966_s5 + $0x18] sm:$0xff]  ;;  %v266_v57 = vld [vmem:[%s966_s5 + $0x20] sm:$0xff]  ;;  %v267_v58 = vld [vmem:[%s966_s5 + $0x28] sm:$0xff] }
   0xe   :  { %147 = vperm.xlu1 %743, %v137_v15   ;;  %v268_v59 = vld [vmem:[%s966_s5 + $0x30] sm:$0xff]  ;;  %v269_v60 = vld [vmem:[%s966_s5 + $0x38] sm:$0xff]  ;;  %v456_v61 = vld [vmem:[%s968_s7] sm:$0xff] }
   0xf   :  { %v458_v35 = vld [vmem:[%s968_s7 + $0x10] sm:$0xff] }
  0x10   :  { %280 = vperm.xlu0 %742, %v270_v7  }
  0x12   :  { %157 = vperm.xlu1 %743, %v139_v16  }
  0x14   :  { %290 = vperm.xlu0 %742, %v272_v8  }
  0x16   :  { %285 = vperm.xlu1 %743, %v271_v17  }
  0x18   :  { %300 = vperm.xlu0 %742, %v274_v9  }
  0x1a   :  { %295 = vperm.xlu1 %743, %v273_v18  }
  0x1c   :  { %310 = vperm.xlu0 %742, %v276_v10  }
  0x1e   :  { %305 = vperm.xlu1 %743, %v275_v19  }
  0x20   :  { %466 = vperm.xlu0 %742, %v460_v11  }
  0x22   :  { %315 = vperm.xlu1 %743, %v277_v20  }
  0x24   :  { %476 = vperm.xlu0 %742, %v462_v12  }
  0x26   :  { %471 = vperm.xlu1 %743, %v461_v21  }
  0x2a   :  { %481 = vperm.xlu1 %743, %v463_v22  }
  0x83   :  { %v41_v23 = vpop.permute.xlu0 %40 }
  0x87   :  { %v46_v24 = vpop.permute.xlu0 %45 }
  0x89   :  { %v143_v36 = vpop.permute.xlu1 %142 }
  0x8b   :  { %v153_v46 = vpop.permute.xlu0 %152 }
  0x8d   :  { %v148_v37 = vpop.permute.xlu1 %147 }
  0x8f   :  { %v281_v63 = vpop.permute.xlu0 %280 }
  0x91   :  { %v158_v43 = vpop.permute.xlu1 %157 }
  0x93   :  { %v291_v2 = vpop.permute.xlu0 %290 }
  0x95   :  { %v286_v62 = vpop.permute.xlu1 %285 }
  0x97   :  { %v301_v14 = vpop.permute.xlu0 %300 }
  0x99   :  { %v296_v0 = vpop.permute.xlu1 %295 }
  0x9d   :  { %v306_v11 = vpop.permute.xlu1 %305 }
  0xd7   :  { %v657_v25 = vpop.f32.mrb[0].mxu0 }
  0xd8   :  { %v127_v26 = vadd.f32 %v657_v25, %v46_v24  ;;  %v121_v27 = vpop.f32.mrb[1].mxu0 }
  0xd9   :  { %v122_v28 = vadd.f32 %v121_v27, %v41_v23  ;;  %v316_v23 = vpop.permute.xlu1 %315 }
  0xda   :  { %v131_v29 = vmax.f32 %v127_v26, 0.0  ;;  %v311_v26 = vpop.permute.xlu0 %310 }
  0xdb   :  { %v130_v30 = vmax.f32 %v122_v28, 0.0 }
  0xdd   :  { %v710_v31 = vpack.c.bf16 %v131_v29, %v130_v30 }
  0xdf   :  { %711 = vmatprep.subr.bf16.mxu1 %v710_v31 }
  0xe0   :  { %713 = vmatpush3.bf16.msra.mxu1 %v710_v31 }
  0xe3   :  { %663 = vmatmul.mubr.msk.f32.vlgmr.msra.gmra.mrb[0].mxu1 %vm160_vm1, %v133_v32 }
  0xe4   :  { %665 = vmatprep.mubr.msk.f32.mxu1 %vm160_vm1, %v134_v33 }
  0xe7   :  { %666 = vmatmul.mubr.msk.f32.gmra.mrb[2].mxu1 %vm160_vm1, %v135_v34  ;;  %v457_v34 = vld [vmem:[%s968_s7 + $0x8] sm:$0xff] }
  0xe8   :  { %704 = vmatprep.mubr.msk.f32.mxu1 %vm484_vm3, %v456_v61 }
 0x1b6   :  { %v664_v38 = vpop.f32.mrb[0].mxu1 }
 0x1b7   :  { %v245_v39 = vadd.f32 %v664_v38, %v148_v37  ;;  %v239_v40 = vpop.f32.mrb[1].mxu1  ;;  %v472_v37 = vpop.permute.xlu1 %471 }
 0x1b8   :  { %v240_v41 = vadd.f32 %v239_v40, %v143_v36  ;;  %v459_v36 = vld [vmem:[%s968_s7 + $0x18] sm:$0xff]  ;;  %v467_v38 = vpop.permute.xlu0 %466  ;;  %s744_s7 = scalar_lea.vmem %s592_s26, 512 }
 0x1b9   :  { %v259_v42 = vmax.f32 %v245_v39, 0.0  ;;  %p745_p0 = scmp.ne.s32.totalorder %s592_s26, %s744_s7  ;;  %p750_p2 = scmp.lt.s32.totalorder %s744_s7, %s744_s7 }
 0x1ba   :  { %v258_v44 = vmax.f32 %v240_v41, 0.0  ;;  %v667_v45 = vpop.f32.mrb[2].mxu1 }
 0x1bb   :  { %v255_v47 = vadd.f32 %v667_v45, %v158_v43  ;;  %v249_v48 = vpop.f32.mrb[3].mxu1  ;;  %v482_v43 = vpop.permute.xlu1 %481  ;;  %p751_p3 = por %p750_p2, %p749_p1 }
 0x1bc   :  { %v714_v49 = vpack.c.bf16 %v259_v42, %v258_v44  ;;  %v250_v50 = vadd.f32 %v249_v48, %v153_v46  ;;  %v477_v45 = vpop.permute.xlu0 %476 }
 0x1bd   :  { %v261_v51 = vmax.f32 %v255_v47, 0.0  ;;  %p752_p4 = pnand %p751_p3, %p745_p0 }
 0x1be   :  { %v260_v52 = vmax.f32 %v250_v50, 0.0  ;;  %715 = vmatprep.subr.bf16.mxu0 %v714_v49 }
 0x1bf   :  { %717 = vmatpush3.bf16.msra.mxu0 %v714_v49 }
 0x1c0   :  { %v718_v53 = vpack.c.bf16 %v261_v51, %v260_v52 }
 0x1c2   :  { %719 = vmatprep.subr.bf16.mxu0 %v718_v53 }
 0x1c3   :  { %721 = vmatpush3.bf16.msra.mxu0 %v718_v53 }
 0x1c6   :  { %677 = vmatmul.mubr.msk.f32.vlgmr.msra.gmra.mrb[2].mxu0 %vm318_vm2, %v263_v54 }
 0x1c7   :  { %679 = vmatprep.mubr.msk.f32.mxu0 %vm318_vm2, %v264_v55 }
 0x1ca   :  { %680 = vmatmul.mubr.msk.f32.gmra.mrb[4].mxu0 %vm318_vm2, %v265_v56 }
 0x1cb   :  { %682 = vmatprep.mubr.msk.f32.mxu0 %vm318_vm2, %v266_v57 }
 0x1ce   :  { %683 = vmatmul.mubr.msk.f32.gmra.mrb[6].mxu0 %vm318_vm2, %v267_v58 }
 0x1cf   :  { %685 = vmatprep.mubr.msk.f32.mxu0 %vm318_vm2, %v268_v59 }
 0x1d2   :  { %686 = vmatmul.mubr.msk.f32.gmra.mrb[8].mxu0 %vm318_vm2, %v269_v60 }
 0x299   :  { %v678_v1 = vpop.f32.mrb[2].mxu0 }
 0x29a   :  { %v415_v3 = vadd.f32 %v678_v1, %v286_v62  ;;  %v409_v4 = vpop.f32.mrb[3].mxu0 }
 0x29b   :  { %v410_v5 = vadd.f32 %v409_v4, %v281_v63 }
 0x29c   :  { %v449_v6 = vmax.f32 %v415_v3, 0.0 }
 0x29d   :  { %v448_v7 = vmax.f32 %v410_v5, 0.0  ;;  %v681_v8 = vpop.f32.mrb[4].mxu0 }
 0x29e   :  { %v425_v9 = vadd.f32 %v681_v8, %v296_v0  ;;  %v419_v10 = vpop.f32.mrb[5].mxu0 }
 0x29f   :  { %v722_v12 = vpack.c.bf16 %v449_v6, %v448_v7  ;;  %v420_v13 = vadd.f32 %v419_v10, %v291_v2 }
 0x2a0   :  { %v451_v15 = vmax.f32 %v425_v9, 0.0 }
 0x2a1   :  { %v450_v16 = vmax.f32 %v420_v13, 0.0  ;;  %v684_v17 = vpop.f32.mrb[6].mxu0  ;;  %723 = vmatprep.subr.bf16.mxu1 %v722_v12 }
 0x2a2   :  { %v435_v18 = vadd.f32 %v684_v17, %v306_v11  ;;  %v429_v19 = vpop.f32.mrb[7].mxu0  ;;  %725 = vmatpush3.bf16.msra.mxu1 %v722_v12 }
 0x2a3   :  { %v726_v20 = vpack.c.bf16 %v451_v15, %v450_v16  ;;  %v430_v21 = vadd.f32 %v429_v19, %v301_v14 }
 0x2a4   :  { %v453_v22 = vmax.f32 %v435_v18, 0.0 }
 0x2a5   :  { %v452_v24 = vmax.f32 %v430_v21, 0.0  ;;  %v687_v25 = vpop.f32.mrb[8].mxu0  ;;  %727 = vmatprep.subr.bf16.mxu1 %v726_v20 }
 0x2a6   :  { %v445_v27 = vadd.f32 %v687_v25, %v316_v23  ;;  %v439_v28 = vpop.f32.mrb[9].mxu0  ;;  %729 = vmatpush3.bf16.msra.mxu1 %v726_v20 }
 0x2a7   :  { %v730_v29 = vpack.c.bf16 %v453_v22, %v452_v24  ;;  %v440_v30 = vadd.f32 %v439_v28, %v311_v26 }
 0x2a8   :  { %v455_v31 = vmax.f32 %v445_v27, 0.0 }
 0x2a9   :  { %v454_v32 = vmax.f32 %v440_v30, 0.0  ;;  %731 = vmatprep.subr.bf16.mxu1 %v730_v29 }
 0x2aa   :  { %733 = vmatpush3.bf16.msra.mxu1 %v730_v29 }
 0x2ab   :  { %v734_v33 = vpack.c.bf16 %v455_v31, %v454_v32 }
 0x2ad   :  { %735 = vmatprep.subr.bf16.mxu1 %v734_v33 }
 0x2ae   :  { %737 = vmatpush3.bf16.msra.mxu1 %v734_v33 }
 0x2b1   :  { %705 = vmatmul.mubr.msk.f32.vlgmr.msra.gmra.mrb[4].mxu1 %vm484_vm3, %v457_v34 }
 0x2b2   :  { %707 = vmatprep.mubr.msk.f32.mxu1 %vm484_vm3, %v458_v35 }
 0x2b5   :  { %708 = vmatmul.mubr.msk.f32.gmra.mrb[6].mxu1 %vm484_vm3, %v459_v36 }
 0x384   :  { %v706_v39 = vpop.f32.mrb[4].mxu1 }
 0x385   :  { %v569_v40 = vadd.f32 %v706_v39, %v472_v37  ;;  %v563_v41 = vpop.f32.mrb[5].mxu1 }
 0x386   :  { %v564_v42 = vadd.f32 %v563_v41, %v467_v38 }
 0x387   :  { %583 = vst [vmem:[#allocation2 + $0x8] sm:$0xff] %v569_v40 }
 0x388   :  { %582 = vst [vmem:[#allocation2] sm:$0xff] %v564_v42  ;;  %v709_v44 = vpop.f32.mrb[6].mxu1 }
 0x389   :  { %v579_v46 = vadd.f32 %v709_v44, %v482_v43  ;;  %v573_v47 = vpop.f32.mrb[7].mxu1 }
 0x38a   :  { %v574_v48 = vadd.f32 %v573_v47, %v477_v45 }
 0x38b   :  { %585 = vst [vmem:[#allocation2 + $0x18] sm:$0xff] %v579_v46 }
 0x38c   :  { %584 = vst [vmem:[#allocation2 + $0x10] sm:$0xff] %v574_v48 }
 0x38d   :  { %755 = shalt.err (!%p752_p4)
}
 0x38e   :  { %s756_s28 = scalar_lea.hbm %s970_s9, 512 }
 0x38f   :  { %p757_p5 = scmp.ne.s32.totalorder %s970_s9, %s756_s28  ;;  %p760_p6 = scmp.lt.u32.totalorder %s756_s28, %s970_s9 }
 0x391   :  { %p762_p7 = pnand %p760_p6, %p757_p5 }
 0x393   :  { %765 = shalt.err (!%p762_p7)
}
 0x394   :  { %s770_s11 = smov 128   ;;  %s771_s12 = smov 8  }
 0x395   :  { %597 = dma.vmem_to_hbm [thread:$0]  %s592_s26, 512, %s970_s9, [#allocation3], %s770_s11, %s770_s11, %s771_s12  }
 0x396   :  { %766 = dma.done.wait [#allocation3], 512  }
 0x397   :  { %767 = vsyncadd [#allocation3], 4294966784 }
 0x398   :  { %601 = vsyncpa [#allocation3], 1 }

</bundles_post_ra>
